<compile_context>
chip_gen: v6e
topology: v6e:2x2x1
jax: 0.10.0
libtpu: 0.0.40
codegen_flags: <defaults>
</compile_context>

<pallas_src>
import jax
import jax.numpy as jnp
from jax.experimental import pallas as pl
from jax.experimental.pallas import tpu as pltpu

_LANES = 128
_SUBLANES = 8
_MAX_COLS = 4096                        # lane-dense slab width target
_TARGET_BLOCK_BYTES = 2 * 1024 * 1024   # ~2 MiB per block
_VMEM_LIMIT_BYTES = 32 * 1024 * 1024    # safe on v5e / v6e / v7x
_GRID_STEP_TARGET = 8                   # keep >=8 steps so v7x 2 TCs can split


# ---------------------------------------------------------------------------
# Elementwise activation kernels (native dtype in, native dtype out).
# ---------------------------------------------------------------------------
def _hardtanh_kernel(x_ref, o_ref):
    x = x_ref[...]
    lo = jnp.asarray(0, dtype=x.dtype)
    hi = jnp.asarray(20, dtype=x.dtype)
    o_ref[...] = jnp.minimum(jnp.maximum(x, lo), hi)


def _relu_kernel(x_ref, o_ref):
    x = x_ref[...]
    o_ref[...] = jnp.maximum(x, jnp.asarray(0, dtype=x.dtype))


def _elu_kernel(x_ref, o_ref):
    x = x_ref[...]
    # Clamp the expm1 argument so the unselected branch never produces inf.
    neg = jnp.expm1(jnp.minimum(x, jnp.asarray(0, dtype=x.dtype)))
    o_ref[...] = jnp.where(x > 0, x, neg).astype(o_ref.dtype)


def _leaky_relu_kernel(x_ref, o_ref):
    x = x_ref[...]
    o_ref[...] = jnp.where(x > 0, x, x * jnp.asarray(0.01, dtype=x.dtype)).astype(
        o_ref.dtype
    )


def _gelu_kernel(x_ref, o_ref):
    # Exact (erf) GELU; widen in-register only — free under the HBM bottleneck.
    x = x_ref[...].astype(jnp.float32)
    o_ref[...] = jax.nn.gelu(x, approximate=False).astype(o_ref.dtype)


_SUPPORTED_ACTIVATIONS = {
    "hardtanh": _hardtanh_kernel,
    "relu": _relu_kernel,
    "elu": _elu_kernel,
    "leaky_relu": _leaky_relu_kernel,
    "gelu": _gelu_kernel,
}


# ---------------------------------------------------------------------------
# Tiling helpers.
# ---------------------------------------------------------------------------
def _choose_2d_shape(total):
    """Factor `total` (positive multiple of 128) as rows*cols with cols a wide
    multiple of 128, preferring rows to be a multiple of 8 (full vreg tiles)."""
    fallback = None
    for cols in range(min(_MAX_COLS, total), 0, -_LANES):
        if total % cols == 0:
            rows = total // cols
            if rows % _SUBLANES == 0:
                return rows, cols
            if fallback is None:
                fallback = (rows, cols)
    return fallback  # always set: cols == 128 divides total


def _run_elementwise(kernel, x2d):
    rows, cols = x2d.shape
    itemsize = jnp.dtype(x2d.dtype).itemsize

    if rows <= _SUBLANES:
        # Tiny input: single block equal to the full array (allowed by Mosaic).
        block_rows = rows
    else:
        # ~2 MiB blocks, multiple of 8 sublanes.
        block_rows = max(
            _SUBLANES,
            (_TARGET_BLOCK_BYTES // (cols * itemsize)) // _SUBLANES * _SUBLANES,
        )
        # Keep >= ~8 grid steps when there is enough work (v7x megacore).
        if rows > _SUBLANES * _GRID_STEP_TARGET:
            cap = -(-rows // _GRID_STEP_TARGET)          # ceil(rows / 8)
            cap = -(-cap // _SUBLANES) * _SUBLANES       # round up to mult of 8
            block_rows = min(block_rows, cap)
        block_rows = min(block_rows, rows)

    grid = (pl.cdiv(rows, block_rows),)  # ceil-div; tail block writes are masked

    return pl.pallas_call(
        kernel,
        out_shape=jax.ShapeDtypeStruct((rows, cols), x2d.dtype),
        grid_spec=pltpu.PrefetchScalarGridSpec(
            num_scalar_prefetch=0,
            grid=grid,
            in_specs=[pl.BlockSpec((block_rows, cols), lambda i: (i, 0))],
            out_specs=pl.BlockSpec((block_rows, cols), lambda i: (i, 0)),
        ),
        compiler_params=pltpu.CompilerParams(
            dimension_semantics=("parallel",),
            vmem_limit_bytes=_VMEM_LIMIT_BYTES,
        ),
    )(x2d)


# ---------------------------------------------------------------------------
# Module port.
# ---------------------------------------------------------------------------
class CNNExtractor:
    """JAX/Pallas port of the PyTorch CNNExtractor base module."""

    supported_activations = tuple(_SUPPORTED_ACTIVATIONS)

    def __init__(self, activation: str = "hardtanh") -> None:
        self._kernel = _SUPPORTED_ACTIVATIONS[activation]
        self.activation = self._apply_activation

    def _apply_activation(self, x):
        """Apply the configured activation elementwise via a Pallas kernel.

        x: any shape (NCHW for conv features). Returned with identical
        shape/dtype; no intermediate dtype casts in HBM.
        """
        orig_shape = x.shape
        total = 1
        for d in orig_shape:
            total *= d
        if total == 0:
            return x

        if total % _LANES == 0:
            # Common conv-feature-map case: pure reshape, no padding copies.
            rows, cols = _choose_2d_shape(total)
            out2d = _run_elementwise(self._kernel, jnp.reshape(x, (rows, cols)))
            return jnp.reshape(out2d, orig_shape)

        # TODO(synk): rare ragged case (total not a multiple of 128) still pays
        # one pad + slice pass; could be replaced by an in-kernel masked tail.
        tile_elems = _SUBLANES * _LANES
        padded = -(-total // tile_elems) * tile_elems
        x_flat = jnp.pad(jnp.reshape(x, (total,)), (0, padded - total))
        rows, cols = _choose_2d_shape(padded)
        out2d = _run_elementwise(self._kernel, jnp.reshape(x_flat, (rows, cols)))
        return jnp.reshape(jnp.reshape(out2d, (padded,))[:total], orig_shape)

    def forward(self, *args, **kwargs):
        # Mirrors the PyTorch base class: forward itself is not implemented.
        raise NotImplementedError


if __name__ == "__main__":
    key = jax.random.PRNGKey(0)

    # NCHW conv-feature-style input (batch=2, channels=4, spatial=16x16).
    x = jax.random.normal(key, (2, 4, 16, 16), dtype=jnp.float32) * 15.0

    extractor = CNNExtractor(activation="hardtanh")
    out = jax.block_until_ready(extractor.activation(x))
    ref = jnp.clip(x, 0.0, 20.0)
    assert out.shape == x.shape and out.dtype == x.dtype
    assert jnp.allclose(out, ref, atol=1e-6), "f32 mismatch vs reference hardtanh"

    # bf16 stays bf16 end-to-end (no wrapper upcast, no extra HBM pass).
    xb = x.astype(jnp.bfloat16)
    outb = jax.block_until_ready(extractor.activation(xb))
    assert outb.dtype == jnp.bfloat16 and outb.shape == xb.shape
    assert jnp.allclose(outb, jnp.clip(xb, 0, 20)), "bf16 mismatch"

    # Ragged (non-multiple-of-128) fallback path.
    xr = jax.random.normal(jax.random.PRNGKey(1), (3, 5, 7), dtype=jnp.float32) * 30.0
    outr = jax.block_until_ready(extractor.activation(xr))
    assert jnp.allclose(outr, jnp.clip(xr, 0.0, 20.0), atol=1e-6), "ragged mismatch"

    print("KERNEL_OK")
</pallas_src>

<mosaic_0001>
module attributes {stable_mosaic.version = 11 : i64} {
  func.func @_hardtanh_kernel(%arg0: i32, %arg1: memref<8x256xf32, #tpu.memory_space<vmem>>, %arg2: memref<8x256xf32, #tpu.memory_space<vmem>>) attributes {dimension_semantics = [#tpu.dimension_semantics<parallel>], iteration_bounds = array<i64: 1>, scalar_prefetch = 0 : i64, scratch_operands = 0 : i64, tpu.core_type = #tpu.core_type<tc>, window_params = [{transform_indices = @transform_0, window_bounds = array<i64: 8, 256>}, {transform_indices = @transform_1, window_bounds = array<i64: 8, 256>}]} {
    %c0 = arith.constant 0 : index
    %c0_0 = arith.constant 0 : index
    %0 = vector.load %arg1[%c0, %c0_0] : memref<8x256xf32, #tpu.memory_space<vmem>>, vector<8x256xf32>
    %cst = arith.constant 0.000000e+00 : f32
    %1 = vector.broadcast %cst : f32 to vector<8x256xf32>
    %2 = arith.maximumf %0, %1 : vector<8x256xf32>
    %cst_1 = arith.constant 2.000000e+01 : f32
    %3 = vector.broadcast %cst_1 : f32 to vector<8x256xf32>
    %4 = arith.minimumf %2, %3 : vector<8x256xf32>
    %c0_2 = arith.constant 0 : index
    %c0_3 = arith.constant 0 : index
    %5 = vector.load %arg2[%c0_2, %c0_3] : memref<8x256xf32, #tpu.memory_space<vmem>>, vector<8x256xf32>
    tpu.vector_store %arg2[%c0_2, %c0_3], %4 {strides = array<i32>} : memref<8x256xf32, #tpu.memory_space<vmem>>, vector<8x256xf32>,
    return
  }
  func.func @transform_0(%arg0: i32) -> (i32, i32) {
    %c0_i32 = arith.constant 0 : i32
    %c0_i32_0 = arith.constant 0 : i32
    return %arg0, %c0_i32 : i32, i32
  }
  func.func @transform_1(%arg0: i32) -> (i32, i32) {
    %c0_i32 = arith.constant 0 : i32
    %c0_i32_0 = arith.constant 0 : i32
    return %arg0, %c0_i32 : i32, i32
  }
}

</mosaic_0001>

<bundles_post_ra>
// kernel: tpu_custom_call.1
= control target key start
LH: loop header
LB: loop body
LE: loop exit
PB: predicated region body
PF: predicated region fallthrough
CT: control target
= control target key end

     0   :  { %6 = vsyncpa [#allocation3], 0  ;;  %s108_s0 = inlined_call_operand.hbm [shape: f32[8,256], index: 0, kind: input, shape index: {}]   ;;  %s109_s1 = inlined_call_operand.hbm [shape: f32[8,256], index: 1, kind: output, shape index: {}]  }
   0x1   :  { %7 = vsyncpa [#allocation4], 0  ;;  %s90_s6 = smov [#allocation2]  }
   0x2   :  { %s14_s7 = sshll.u32 %s90_s6, 4  ;;  %s15_s7 = int_to_ptr.vmem [resolvable:$true] %s14_s7 }
   0x3   :  { %s54_s8 = scalar_lea.vmem %s15_s7, 256  ;;  %p59_p1 = scmp.lt.s32.totalorder %s15_s7, %s15_s7 }
   0x4   :  { %p55_p0 = scmp.ne.s32.totalorder %s15_s7, %s54_s8  ;;  %p60_p2 = scmp.lt.s32.totalorder %s54_s8, %s54_s8 }
   0x6   :  { %p61_p3 = por %p60_p2, %p59_p1 }
   0x8   :  { %p62_p4 = pnand %p61_p3, %p55_p0 }
   0xa   :  { %65 = shalt.err (!%p62_p4)
}
   0xb   :  { %17 = dma.hbm_to_vmem [thread:$0]  %s108_s0, 256, %s15_s7, [#allocation3]  }
   0xc   :  { %86 = dma.done.wait [#allocation3], 256  }
   0xd   :  { %87 = vsyncadd [#allocation3], 4294967040  ;;  %v21_v0 = vld [vmem:[#allocation2] sm:$0xff]  ;;  %v22_v1 = vld [vmem:[#allocation2 + $0x8] sm:$0xff]  ;;  %s91_s11 = smov [#allocation5]  }
   0xe   :  { %s35_s12 = sshll.u32 %s91_s11, 4  ;;  %v23_v2 = vmax.f32 %v21_v0, 0.0  ;;  %v24_v3 = vmax.f32 %v22_v1, 0.0  ;;  %s36_s12 = int_to_ptr.vmem [resolvable:$true] %s35_s12 }
   0xf   :  { %s66_s13 = scalar_lea.vmem %s36_s12, 256  ;;  %p71_p6 = scmp.lt.s32.totalorder %s36_s12, %s36_s12 }
  0x10   :  { %v25_v4 = vmin.f32 %v23_v2, 20.0  ;;  %v26_v5 = vmin.f32 %v24_v3, 20.0  ;;  %p67_p5 = scmp.ne.s32.totalorder %s36_s12, %s66_s13  ;;  %p72_p7 = scmp.lt.s32.totalorder %s66_s13, %s66_s13 }
  0x12   :  { %27 = vst [vmem:[#allocation5] sm:$0xff] %v25_v4  ;;  %28 = vst [vmem:[#allocation5 + $0x8] sm:$0xff] %v26_v5  ;;  %p73_p8 = por %p72_p7, %p71_p6 }
  0x14   :  { %p74_p9 = pnand %p73_p8, %p67_p5 }
  0x16   :  { %77 = shalt.err (!%p74_p9)
}
  0x17   :  { %38 = dma.vmem_to_hbm [thread:$0]  %s36_s12, 256, %s109_s1, [#allocation4]  }
  0x18   :  { %88 = dma.done.wait [#allocation4], 256  }
  0x19   :  { %89 = vsyncadd [#allocation4], 4294967040 }
  0x1a   :  { %42 = vsyncpa [#allocation3], 1 }
  0x1b   :  { %43 = vsyncpa [#allocation4], 1 }

</bundles_post_ra>
